<compile_context>
chip_gen: v5e
topology: v5e:2x2
jax: 0.10.0
libtpu: 0.0.40
codegen_flags: <defaults>
</compile_context>

<pallas_src>
import functools
import math

import jax
import jax.numpy as jnp
from jax.experimental import pallas as pl
from jax.experimental.pallas import tpu as pltpu

_INV_SQRT2 = 1.0 / math.sqrt(2.0)


def _round_up(x, n):
    return ((x + n - 1) // n) * n


def _cdiv(a, b):
    return (a + b - 1) // b


def _pad_to(a, shape):
    pads = [(0, t - s) for s, t in zip(a.shape, shape)]
    if any(p[1] for p in pads):
        return jnp.pad(a, pads)
    return a


def _tpu_config():
    """(vmem_capacity_bytes, tm_max, tk_max, num_tensorcores) for this device."""
    kind = ""
    try:
        kind = jax.devices()[0].device_kind.lower()
    except Exception:
        pass
    if "v7" in kind:
        vmem, tm_max, tk_max, num_tc = 64 << 20, 512, 512, 2
    elif "v6" in kind:
        vmem, tm_max, tk_max, num_tc = 128 << 20, 512, 1024, 1
    elif "v5p" in kind:
        vmem, tm_max, tk_max, num_tc = 128 << 20, 512, 1024, 2
    elif "v5" in kind:  # v5e / v5 lite
        vmem, tm_max, tk_max, num_tc = 128 << 20, 256, 1024, 1
    else:
        # Unknown part: be conservative on VMEM, assume 2 TCs.
        vmem, tm_max, tk_max, num_tc = 64 << 20, 512, 512, 2
    try:
        vmem = int(pltpu.get_tpu_info().vmem_capacity_bytes)
    except Exception:
        pass
    return vmem, tm_max, tk_max, num_tc


def _choose_tk(inner, dim_p, dim_out_p, nb, tm_max, tk_max, vmem_budget):
    """Pick the inner (reduction) tile and the padded inner dim."""
    inner_p0 = _round_up(inner, 128)
    lanes = inner_p0 // 128
    # Collapse the reduction axis when the whole (padded, compute-dtype) weight
    # set plus the largest f32 `h` intermediate fits comfortably: the weight
    # block index then never changes, so W1/W2 are DMA'd exactly once.
    resident_cost = (2 * (dim_p + dim_out_p) * inner_p0 * nb   # double-buffered W1/W2
                     + 2 * tm_max * inner_p0 * 4)              # f32 h (+ headroom)
    if resident_cost <= int(0.55 * vmem_budget):
        return inner_p0, inner_p0
    # Otherwise: largest tk (multiple of 128, <= generation tk_max) whose
    # double-buffered weight slices stay under ~half the budget, nudged so that
    # n_k * tk has minimal zero padding over `inner`.
    weight_budget = int(0.5 * vmem_budget)
    tk_cap = max(128, (weight_budget // (2 * (dim_p + dim_out_p) * nb)) // 128 * 128)
    tk_cap = min(tk_cap, tk_max, inner_p0)
    n_k = _cdiv(inner_p0, tk_cap)
    tk = 128 * _cdiv(lanes, n_k)
    inner_p = n_k * tk
    return tk, inner_p


def _footprint(tm, tk, dim_p, inner_p, dim_out_p, nb, x_nb, out_nb, cast_x):
    """Approximate VMEM bytes for one grid step (double-buffered tiles)."""
    w = 2 * (dim_p * tk + tk * dim_out_p) * nb      # W1/W2 slices
    xb = 2 * tm * dim_p * x_nb                      # x row tile (input dtype)
    xs = tm * dim_p * nb if cast_x else 0           # in-kernel cast scratch
    ob = 2 * tm * dim_out_p * out_nb                # output tile
    acc = tm * dim_out_p * 4                        # f32 accumulator
    h = 2 * tm * tk * 4                             # f32 h + GELU temps
    bias = 4 * (tk + dim_out_p) * 4
    return w + xb + xs + ob + acc + h + bias


def _ffn_kernel(x_ref, w1_ref, b1_ref, w2_ref, b2_ref, o_ref, acc_ref, *maybe_x_scr):
    """One (row-tile i, inner-tile k) step of GELU(x@W1+b1)@W2 + b2.

    x_ref : (tm, dim_p)       resident across the k axis
    w1_ref: (dim_p, tk)       W1 inner-dim slice
    b1_ref: (1, tk)           b1 inner-dim slice (f32)
    w2_ref: (tk, dim_out_p)   W2 inner-dim slice
    b2_ref: (1, dim_out_p)    b2 (f32)
    o_ref : (tm, dim_out_p)   same block across the k axis
    acc_ref: (tm, dim_out_p)  f32 VMEM accumulator
    maybe_x_scr: optional (tm, dim_p) compute-dtype scratch for in-kernel cast
    """
    x_scr = maybe_x_scr[0] if maybe_x_scr else None
    k = pl.program_id(1)

    @pl.when(k == 0)
    def _init():
        acc_ref[...] = jnp.zeros_like(acc_ref)
        if x_scr is not None:
            # Cast the resident activation row tile to the matmul dtype once
            # per row tile (no wrapper-side HBM pass over x).
            x_scr[...] = x_ref[...].astype(x_scr.dtype)

    xv = x_scr[...] if x_scr is not None else x_ref[...]

    # --- Linear 1 (MXU), f32 accumulation + bias ---
    h = jnp.dot(xv, w1_ref[...], preferred_element_type=jnp.float32)
    h = h + b1_ref[...]

    # --- GELU (exact, erf-based: matches torch.nn.GELU() default), in f32 ---
    h = 0.5 * h * (1.0 + jax.lax.erf(h * _INV_SQRT2))

    # TODO(synk): nn.Dropout(0.2) is identity in eval mode; training-mode dropout
    # (pltpu.prng_random_bits masking) is intentionally not applied here.

    # --- Linear 2 (MXU), accumulated over inner-dim tiles ---
    acc_ref[...] += jnp.dot(h.astype(w2_ref.dtype), w2_ref[...],
                            preferred_element_type=jnp.float32)

    @pl.when(k == pl.num_programs(1) - 1)
    def _finalize():
        o_ref[...] = (acc_ref[...] + b2_ref[...]).astype(o_ref.dtype)


@functools.partial(jax.jit,
                   static_argnames=("dim_out", "tk", "cdt_name", "out_name"))
def _ffn_prepared(x, w1_p, b1_p, w2_p, b2_p, *, dim_out, tk, cdt_name, out_name):
    cdt = jnp.dtype(cdt_name)
    out_dtype = jnp.dtype(out_name)
    cast_x = jnp.dtype(x.dtype) != cdt

    *lead, dim = x.shape
    m = 1
    for s in lead:
        m *= s

    dim_p = w1_p.shape[0]
    inner_p = w1_p.shape[1]
    dim_out_p = w2_p.shape[1]
    nb = cdt.itemsize
    x_nb = jnp.dtype(x.dtype).itemsize
    out_nb = out_dtype.itemsize

    vmem_cap, tm_max, _tk_max, num_tc = _tpu_config()
    vmem_budget = int(0.9 * vmem_cap)

    # Row tile: as large as the generation allows (per-weight-byte arithmetic
    # intensity scales with tm), shrunk only if it does not fit VMEM.
    tm = max(16, _round_up(min(tm_max, _round_up(m, 16)), 16))
    while tm > 16 and _footprint(tm, tk, dim_p, inner_p, dim_out_p,
                                 nb, x_nb, out_nb, cast_x) > vmem_budget:
        tm = max(16, _round_up(tm // 2, 16))
    # Multi-TensorCore parts: ensure the "parallel" axis has >= num_tc steps.
    while num_tc > 1 and tm > 16 and _cdiv(m, tm) < num_tc:
        new_tm = max(16, _round_up(tm // 2, 16))
        if new_tm == tm:
            break
        tm = new_tm

    m_p = _round_up(m, tm)
    n_i, n_k = m_p // tm, inner_p // tk

    x2d = _pad_to(x.reshape(m, dim), (m_p, dim_p))  # stays in the input dtype

    fp = _footprint(tm, tk, dim_p, inner_p, dim_out_p, nb, x_nb, out_nb, cast_x)
    vmem_limit = int(min(vmem_budget, max(32 << 20, int(1.25 * fp))))

    weight_reads = 1 if n_k == 1 else n_i
    cost = pl.CostEstimate(
        flops=2 * m_p * (dim_p * inner_p + inner_p * dim_out_p),
        transcendentals=m_p * inner_p,
        bytes_accessed=int(
            m_p * dim_p * x_nb
            + weight_reads * (dim_p * inner_p + inner_p * dim_out_p) * nb
            + (inner_p + dim_out_p) * 4
            + m_p * dim_out_p * out_nb),
    )

    scratch = [pltpu.VMEM((tm, dim_out_p), jnp.float32)]
    if cast_x:
        scratch.append(pltpu.VMEM((tm, dim_p), cdt))

    out2d = pl.pallas_call(
        _ffn_kernel,
        out_shape=jax.ShapeDtypeStruct((m_p, dim_out_p), out_dtype),
        grid_spec=pltpu.PrefetchScalarGridSpec(
            num_scalar_prefetch=0,
            grid=(n_i, n_k),
            in_specs=[
                pl.BlockSpec((tm, dim_p), lambda i, k: (i, 0)),       # x (resident over k)
                pl.BlockSpec((dim_p, tk), lambda i, k: (0, k)),       # W1 inner slice
                pl.BlockSpec((1, tk), lambda i, k: (0, k)),           # b1 inner slice
                pl.BlockSpec((tk, dim_out_p), lambda i, k: (k, 0)),   # W2 inner slice
                pl.BlockSpec((1, dim_out_p), lambda i, k: (0, 0)),    # b2
            ],
            out_specs=pl.BlockSpec((tm, dim_out_p), lambda i, k: (i, 0)),
            scratch_shapes=scratch,
        ),
        compiler_params=pltpu.CompilerParams(
            dimension_semantics=("parallel", "arbitrary"),
            vmem_limit_bytes=vmem_limit,
        ),
        cost_estimate=cost,
    )(x2d, w1_p, b1_p, w2_p, b2_p)

    return out2d[:m, :dim_out].reshape(*lead, dim_out)


def make_feed_forward(w1, b1, w2, b2, *, compute_dtype=None, out_dtype=None):
    """Prepare (pad + pre-cast) FFN parameters once; return apply(x).

    w1: (dim, inner)   (transposed vs torch nn.Linear.weight), b1: (inner,)
    w2: (inner, dim_out), b2: (dim_out,)
    compute_dtype: matmul-operand dtype; defaults to bfloat16 when the params
        are float32 (f32 accumulation is always kept). Pass jnp.float32 for
        bit-exact f32 matmuls.
    """
    dim, inner = w1.shape
    dim_out = w2.shape[1]
    if compute_dtype is None:
        compute_dtype = jnp.bfloat16 if w1.dtype == jnp.float32 else w1.dtype
    cdt = jnp.dtype(compute_dtype)
    nb = cdt.itemsize

    dim_p = _round_up(dim, 128)
    dim_out_p = _round_up(dim_out, 128)

    vmem_cap, tm_max, tk_max, _num_tc = _tpu_config()
    tk, inner_p = _choose_tk(inner, dim_p, dim_out_p, nb, tm_max, tk_max,
                             int(0.9 * vmem_cap))

    # Pre-pad / pre-cast the parameters ONCE (outside the per-call jit), so the
    # weight-stream-bound kernel never pays an extra HBM pass per invocation.
    w1_p = _pad_to(w1.astype(cdt), (dim_p, inner_p))
    w2_p = _pad_to(w2.astype(cdt), (inner_p, dim_out_p))
    b1_p = _pad_to(b1.astype(jnp.float32).reshape(1, inner), (1, inner_p))
    b2_p = _pad_to(b2.astype(jnp.float32).reshape(1, dim_out), (1, dim_out_p))
    w1_p, b1_p, w2_p, b2_p = jax.device_put((w1_p, b1_p, w2_p, b2_p))

    out_name = None if out_dtype is None else jnp.dtype(out_dtype).name

    def apply(x):
        o_name = out_name if out_name is not None else jnp.dtype(x.dtype).name
        return _ffn_prepared(x, w1_p, b1_p, w2_p, b2_p,
                             dim_out=int(dim_out), tk=int(tk),
                             cdt_name=cdt.name, out_name=o_name)

    return apply


def feed_forward(x, w1, b1, w2, b2, *, compute_dtype=None, out_dtype=None):
    """One-shot convenience wrapper (prefer make_feed_forward for reuse)."""
    return make_feed_forward(w1, b1, w2, b2, compute_dtype=compute_dtype,
                             out_dtype=out_dtype)(x)


def _reference(x, w1, b1, w2, b2):
    h = jnp.einsum("...d,dh->...h", x, w1) + b1
    h = 0.5 * h * (1.0 + jax.lax.erf(h * _INV_SQRT2))
    return jnp.einsum("...h,ho->...o", h, w2) + b2


if __name__ == "__main__":
    # FeedForward(dim=32, mult=4) -> inner_dim=128, dim_out=32 (eval mode).
    batch, seq, dim, mult = 2, 8, 32, 4
    inner = dim * mult
    dim_out = dim

    key = jax.random.PRNGKey(0)
    kx, k1, k2, k3, k4 = jax.random.split(key, 5)

    x = jax.random.normal(kx, (batch, seq, dim), dtype=jnp.float32)

    # Deterministic synthetic parameters (PyTorch-Linear-like scale).
    lim1 = 1.0 / math.sqrt(dim)
    lim2 = 1.0 / math.sqrt(inner)
    w1 = jax.random.uniform(k1, (dim, inner), jnp.float32, -lim1, lim1)
    b1 = jax.random.uniform(k2, (inner,), jnp.float32, -lim1, lim1)
    w2 = jax.random.uniform(k3, (inner, dim_out), jnp.float32, -lim2, lim2)
    b2 = jax.random.uniform(k4, (dim_out,), jnp.float32, -lim2, lim2)

    ref = _reference(x, w1, b1, w2, b2)

    # f32 matmul path: exact parity with the PyTorch module (eval mode).
    ffn_f32 = make_feed_forward(w1, b1, w2, b2, compute_dtype=jnp.float32)
    out_f32 = jax.block_until_ready(ffn_f32(x))
    assert out_f32.shape == (batch, seq, dim_out)
    assert jnp.allclose(out_f32, ref, atol=1e-5, rtol=1e-5), "f32 mismatch vs reference"

    # Default path: bf16 matmul operands (pre-cast weights, in-kernel x cast),
    # f32 accumulation.
    ffn_bf16 = make_feed_forward(w1, b1, w2, b2)
    out_bf16 = jax.block_until_ready(ffn_bf16(x))
    assert out_bf16.shape == (batch, seq, dim_out)
    assert jnp.allclose(out_bf16, ref, atol=5e-2, rtol=5e-2), "bf16 mismatch vs reference"

    print("KERNEL_OK")
</pallas_src>

<mosaic_0001>
module attributes {stable_mosaic.version = 11 : i64} {
  func.func @_ffn_kernel(%arg0: i32, %arg1: i32, %arg2: memref<16x128xf32, #tpu.memory_space<vmem>>, %arg3: memref<128x128xf32, #tpu.memory_space<vmem>>, %arg4: memref<1x128xf32, #tpu.memory_space<vmem>>, %arg5: memref<128x128xf32, #tpu.memory_space<vmem>>, %arg6: memref<1x128xf32, #tpu.memory_space<vmem>>, %arg7: memref<16x128xf32, #tpu.memory_space<vmem>>, %arg8: memref<16x128xf32, #tpu.memory_space<vmem>>) attributes {dimension_semantics = [#tpu.dimension_semantics<parallel>, #tpu.dimension_semantics<arbitrary>], iteration_bounds = array<i64: 1, 1>, scalar_prefetch = 0 : i64, scratch_operands = 1 : i64, tpu.core_type = #tpu.core_type<tc>, window_params = [{transform_indices = @transform_0, window_bounds = array<i64: 16, 128>}, {transform_indices = @transform_1, window_bounds = array<i64: 128, 128>}, {transform_indices = @transform_2, window_bounds = array<i64: 1, 128>}, {transform_indices = @transform_3, window_bounds = array<i64: 128, 128>}, {pipeline_mode = #tpu.pipeline_mode<synchronous>, transform_indices = @transform_4, window_bounds = array<i64: 1, 128>}, {transform_indices = @transform_5, window_bounds = array<i64: 16, 128>}]} {
    %c0_i32 = arith.constant 0 : i32
    %0 = arith.cmpi eq, %arg1, %c0_i32 : i32
    %1 = arith.extui %0 : i1 to i32
    %c0_i32_0 = arith.constant 0 : i32
    %2 = arith.cmpi ne, %1, %c0_i32_0 : i32
    scf.if %2 {
      %cst_18 = arith.constant 0.000000e+00 : f32
      %25 = vector.broadcast %cst_18 : f32 to vector<16x128xf32>
      %c0_19 = arith.constant 0 : index
      %c0_20 = arith.constant 0 : index
      %26 = vector.load %arg8[%c0_19, %c0_20] : memref<16x128xf32, #tpu.memory_space<vmem>>, vector<16x128xf32>
      tpu.vector_store %arg8[%c0_19, %c0_20], %25 {strides = array<i32>} : memref<16x128xf32, #tpu.memory_space<vmem>>, vector<16x128xf32>,
    } else {
    }
    %c0 = arith.constant 0 : index
    %c0_1 = arith.constant 0 : index
    %3 = vector.load %arg2[%c0, %c0_1] : memref<16x128xf32, #tpu.memory_space<vmem>>, vector<16x128xf32>
    %c0_2 = arith.constant 0 : index
    %c0_3 = arith.constant 0 : index
    %4 = vector.load %arg3[%c0_2, %c0_3] : memref<128x128xf32, #tpu.memory_space<vmem>>, vector<128x128xf32>
    %cst = arith.constant dense<0.000000e+00> : vector<16x128xf32>
    %5 = tpu.matmul %3, %4, %cst {dimension_numbers = #tpu.dot_dimension_numbers<[1], [0], [0], [1], [0, 0, 1, 1], [], []>} : vector<16x128xf32>, vector<128x128xf32>, vector<16x128xf32> -> vector<16x128xf32>
    %c0_4 = arith.constant 0 : index
    %c0_5 = arith.constant 0 : index
    %6 = vector.load %arg4[%c0_4, %c0_5] : memref<1x128xf32, #tpu.memory_space<vmem>>, vector<1x128xf32>
    %7 = vector.broadcast %6 : vector<1x128xf32> to vector<16x128xf32>
    %8 = arith.addf %5, %7 : vector<16x128xf32>
    %cst_6 = arith.constant 5.000000e-01 : f32
    %9 = vector.broadcast %cst_6 : f32 to vector<16x128xf32>
    %10 = arith.mulf %9, %8 : vector<16x128xf32>
    %cst_7 = arith.constant 0.707106769 : f32
    %11 = vector.broadcast %cst_7 : f32 to vector<16x128xf32>
    %12 = arith.mulf %8, %11 : vector<16x128xf32>
    %13 = math.erf %12 : vector<16x128xf32>
    %cst_8 = arith.constant 1.000000e+00 : f32
    %14 = vector.broadcast %cst_8 : f32 to vector<16x128xf32>
    %15 = arith.addf %14, %13 : vector<16x128xf32>
    %16 = arith.mulf %10, %15 : vector<16x128xf32>
    %c0_9 = arith.constant 0 : index
    %c0_10 = arith.constant 0 : index
    %17 = vector.load %arg8[%c0_9, %c0_10] : memref<16x128xf32, #tpu.memory_space<vmem>>, vector<16x128xf32>
    %c0_11 = arith.constant 0 : index
    %c0_12 = arith.constant 0 : index
    %18 = vector.load %arg5[%c0_11, %c0_12] : memref<128x128xf32, #tpu.memory_space<vmem>>, vector<128x128xf32>
    %cst_13 = arith.constant dense<0.000000e+00> : vector<16x128xf32>
    %19 = tpu.matmul %16, %18, %cst_13 {dimension_numbers = #tpu.dot_dimension_numbers<[1], [0], [0], [1], [0, 0, 1, 1], [], []>} : vector<16x128xf32>, vector<128x128xf32>, vector<16x128xf32> -> vector<16x128xf32>
    %20 = arith.addf %17, %19 : vector<16x128xf32>
    %c0_14 = arith.constant 0 : index
    %c0_15 = arith.constant 0 : index
    %21 = vector.load %arg8[%c0_14, %c0_15] : memref<16x128xf32, #tpu.memory_space<vmem>>, vector<16x128xf32>
    tpu.vector_store %arg8[%c0_14, %c0_15], %20 {strides = array<i32>} : memref<16x128xf32, #tpu.memory_space<vmem>>, vector<16x128xf32>,
    %c0_i32_16 = arith.constant 0 : i32
    %22 = arith.cmpi eq, %arg1, %c0_i32_16 : i32
    %23 = arith.extui %22 : i1 to i32
    %c0_i32_17 = arith.constant 0 : i32
    %24 = arith.cmpi ne, %23, %c0_i32_17 : i32
    scf.if %24 {
      %c0_18 = arith.constant 0 : index
      %c0_19 = arith.constant 0 : index
      %25 = vector.load %arg8[%c0_18, %c0_19] : memref<16x128xf32, #tpu.memory_space<vmem>>, vector<16x128xf32>
      %c0_20 = arith.constant 0 : index
      %c0_21 = arith.constant 0 : index
      %26 = vector.load %arg6[%c0_20, %c0_21] : memref<1x128xf32, #tpu.memory_space<vmem>>, vector<1x128xf32>
      %27 = vector.broadcast %26 : vector<1x128xf32> to vector<16x128xf32>
      %28 = arith.addf %25, %27 : vector<16x128xf32>
      %c0_22 = arith.constant 0 : index
      %c0_23 = arith.constant 0 : index
      %29 = vector.load %arg7[%c0_22, %c0_23] : memref<16x128xf32, #tpu.memory_space<vmem>>, vector<16x128xf32>
      tpu.vector_store %arg7[%c0_22, %c0_23], %28 {strides = array<i32>} : memref<16x128xf32, #tpu.memory_space<vmem>>, vector<16x128xf32>,
    } else {
    }
    return
  }
  func.func @transform_0(%arg0: i32, %arg1: i32) -> (i32, i32) {
    %c0_i32 = arith.constant 0 : i32
    %c0_i32_0 = arith.constant 0 : i32
    return %arg0, %c0_i32 : i32, i32
  }
  func.func @transform_1(%arg0: i32, %arg1: i32) -> (i32, i32) {
    %c0_i32 = arith.constant 0 : i32
    %c0_i32_0 = arith.constant 0 : i32
    return %c0_i32, %arg1 : i32, i32
  }
  func.func @transform_2(%arg0: i32, %arg1: i32) -> (i32, i32) {
    %c0_i32 = arith.constant 0 : i32
    %c0_i32_0 = arith.constant 0 : i32
    return %c0_i32, %arg1 : i32, i32
  }
  func.func @transform_3(%arg0: i32, %arg1: i32) -> (i32, i32) {
    %c0_i32 = arith.constant 0 : i32
    %c0_i32_0 = arith.constant 0 : i32
    return %arg1, %c0_i32 : i32, i32
  }
  func.func @transform_4(%arg0: i32, %arg1: i32) -> (i32, i32) {
    %c0_i32 = arith.constant 0 : i32
    %c0_i32_0 = arith.constant 0 : i32
    %c0_i32_1 = arith.constant 0 : i32
    return %c0_i32, %c0_i32_0 : i32, i32
  }
  func.func @transform_5(%arg0: i32, %arg1: i32) -> (i32, i32) {
    %c0_i32 = arith.constant 0 : i32
    %c0_i32_0 = arith.constant 0 : i32
    return %arg0, %c0_i32 : i32, i32
  }
}

</mosaic_0001>

<bundles_post_ra>
// kernel: _ffn_prepared.1
= control target key start
LH: loop header
LB: loop body
LE: loop exit
PB: predicated region body
PF: predicated region fallthrough
CT: control target
= control target key end

     0   :  { %10 = vsyncpa [#allocation4], 0  ;;  %s439_s0 = inlined_call_operand.vmem [shape: f32[16,128], index: 0, kind: input, shape index: {}]   ;;  %s440_s1 = inlined_call_operand.hbm [shape: f32[128,128], index: 1, kind: input, shape index: {}]   ;;  %s441_s2 = inlined_call_operand.vmem [shape: f32[1,128], index: 2, kind: input, shape index: {}]   ;;  %s442_s3 = inlined_call_operand.hbm [shape: f32[128,128], index: 3, kind: input, shape index: {}]   ;;  %s443_s4 = inlined_call_operand.vmem [shape: f32[1,128], index: 4, kind: input, shape index: {}]   ;;  %s444_s5 = inlined_call_operand.vmem [shape: f32[16,128], index: 5, kind: output, shape index: {}]  }
   0x1   :  { %s18_s20 = sshll.u32 %s440_s1, 4  ;;  %s19_s20 = int_to_ptr.hbm [resolvable:$true] %s18_s20 }
   0x2   :  { %11 = vsyncpa [#allocation6], 0  ;;  %s351_s21 = smov [#allocation3]   ;;  %s33_s25 = sshll.u32 %s442_s3, 4  ;;  %s34_s25 = int_to_ptr.hbm [resolvable:$true] %s33_s25 }
   0x3   :  { %s20_s22 = sshll.u32 %s351_s21, 4  ;;  %s352_s26 = smov 128   ;;  %s21_s22 = int_to_ptr.vmem [resolvable:$true] %s20_s22 }
   0x4   :  { %s353_s27 = smov 8   ;;  %s354_s28 = smov [#allocation5]  }
   0x5   :  { %26 = dma.hbm_to_vmem [thread:$0]  %s19_s20, 2048, %s21_s22, [#allocation4], %s352_s26, %s352_s26, %s353_s27  }
   0x6   :  { %s35_s29 = sshll.u32 %s354_s28, 4  ;;  %s36_s29 = int_to_ptr.vmem [resolvable:$true] %s35_s29 }
   0x7   :  { %41 = dma.hbm_to_vmem [thread:$0]  %s34_s25, 2048, %s36_s29, [#allocation6], %s352_s26, %s352_s26, %s353_s27  }
   0x8   :  { %347 = dma.done.wait [#allocation4], 2048  }
   0x9   :  { %348 = vsyncadd [#allocation4], 4294965248 }
   0xa   :  { %349 = dma.done.wait [#allocation6], 2048  }
   0xb   :  { %350 = vsyncadd [#allocation6], 4294965248  ;;  %v75_v0 = vld [vmem:[#allocation3 + $0x78] sm:$0xff]  ;;  %v74_v1 = vld [vmem:[#allocation3 + $0x70] sm:$0xff] }
   0xc   :  { %80 = vmatpush.msra.mxu0 %v75_v0  ;;  %257 = vmatpush.msra.mxu2 %v75_v0  ;;  %v73_v2 = vld [vmem:[#allocation3 + $0x68] sm:$0xff]  ;;  %v72_v3 = vld [vmem:[#allocation3 + $0x60] sm:$0xff]  ;;  %v71_v4 = vld [vmem:[#allocation3 + $0x58] sm:$0xff] }
   0xd   :  { %v70_v5 = vld [vmem:[#allocation3 + $0x50] sm:$0xff]  ;;  %v69_v6 = vld [vmem:[#allocation3 + $0x48] sm:$0xff]  ;;  %v68_v7 = vld [vmem:[#allocation3 + $0x40] sm:$0xff] }
   0xe   :  { %81 = vmatpush.msra.mxu0 %v74_v1  ;;  %258 = vmatpush.msra.mxu2 %v74_v1  ;;  %v67_v8 = vld [vmem:[#allocation3 + $0x38] sm:$0xff]  ;;  %v66_v9 = vld [vmem:[#allocation3 + $0x30] sm:$0xff]  ;;  %v65_v10 = vld [vmem:[#allocation3 + $0x28] sm:$0xff] }
   0xf   :  { %v64_v11 = vld [vmem:[#allocation3 + $0x20] sm:$0xff]  ;;  %v63_v12 = vld [vmem:[#allocation3 + $0x18] sm:$0xff]  ;;  %v62_v13 = vld [vmem:[#allocation3 + $0x10] sm:$0xff] }
  0x10   :  { %82 = vmatpush.msra.mxu0 %v73_v2  ;;  %259 = vmatpush.msra.mxu2 %v73_v2  ;;  %v61_v14 = vld [vmem:[#allocation3 + $0x8] sm:$0xff]  ;;  %v60_v15 = vld [vmem:[#allocation3] sm:$0xff]  ;;  %v208_v18 = vld [vmem:[#allocation5 + $0x78] sm:$0xff] }
  0x11   :  { %v58_v16 = vld [vmem:[%s439_s0] sm:$0xff]  ;;  %v59_v17 = vld [vmem:[%s439_s0 + $0x8] sm:$0xff]  ;;  %209 = vmatpush.msra.mxu1 %v208_v18  ;;  %273 = vmatpush.msra.mxu3 %v208_v18  ;;  %v207_v19 = vld [vmem:[#allocation5 + $0x70] sm:$0xff] }
  0x12   :  { %83 = vmatpush.msra.mxu0 %v72_v3  ;;  %260 = vmatpush.msra.mxu2 %v72_v3  ;;  %v206_v20 = vld [vmem:[#allocation5 + $0x68] sm:$0xff]  ;;  %v205_v21 = vld [vmem:[#allocation5 + $0x60] sm:$0xff]  ;;  %v204_v23 = vld [vmem:[#allocation5 + $0x58] sm:$0xff] }
  0x13   :  { %210 = vmatpush.msra.mxu1 %v207_v19  ;;  %274 = vmatpush.msra.mxu3 %v207_v19  ;;  %v293_v22 = vld [vmem:[%s441_s2] ss:$0 sm:$0xff]  ;;  %v203_v25 = vld [vmem:[#allocation5 + $0x50] sm:$0xff]  ;;  %v202_v27 = vld [vmem:[#allocation5 + $0x48] sm:$0xff] }
  0x14   :  { %84 = vmatpush.msra.mxu0 %v71_v4  ;;  %261 = vmatpush.msra.mxu2 %v71_v4  ;;  %v201_v29 = vld [vmem:[#allocation5 + $0x40] sm:$0xff]  ;;  %v200_v30 = vld [vmem:[#allocation5 + $0x38] sm:$0xff]  ;;  %v199_v33 = vld [vmem:[#allocation5 + $0x30] sm:$0xff] }
  0x15   :  { %211 = vmatpush.msra.mxu1 %v206_v20  ;;  %275 = vmatpush.msra.mxu3 %v206_v20  ;;  %v198_v36 = vld [vmem:[#allocation5 + $0x28] sm:$0xff]  ;;  %v197_v39 = vld [vmem:[#allocation5 + $0x20] sm:$0xff]  ;;  %v196_v43 = vld [vmem:[#allocation5 + $0x18] sm:$0xff] }
  0x16   :  { %85 = vmatpush.msra.mxu0 %v70_v5  ;;  %262 = vmatpush.msra.mxu2 %v70_v5  ;;  %v195_v47 = vld [vmem:[#allocation5 + $0x10] sm:$0xff]  ;;  %v194_v52 = vld [vmem:[#allocation5 + $0x8] sm:$0xff]  ;;  %v193_v56 = vld [vmem:[#allocation5] sm:$0xff] }
  0x17   :  { %212 = vmatpush.msra.mxu1 %v205_v21  ;;  %276 = vmatpush.msra.mxu3 %v205_v21 }
  0x18   :  { %86 = vmatpush.msra.mxu0 %v69_v6  ;;  %263 = vmatpush.msra.mxu2 %v69_v6 }
  0x19   :  { %213 = vmatpush.msra.mxu1 %v204_v23  ;;  %277 = vmatpush.msra.mxu3 %v204_v23 }
  0x1a   :  { %87 = vmatpush.msra.mxu0 %v68_v7  ;;  %264 = vmatpush.msra.mxu2 %v68_v7 }
  0x1b   :  { %214 = vmatpush.msra.mxu1 %v203_v25  ;;  %278 = vmatpush.msra.mxu3 %v203_v25 }
  0x1c   :  { %88 = vmatpush.msra.mxu0 %v67_v8  ;;  %265 = vmatpush.msra.mxu2 %v67_v8 }
  0x1d   :  { %215 = vmatpush.msra.mxu1 %v202_v27  ;;  %279 = vmatpush.msra.mxu3 %v202_v27 }
  0x1e   :  { %89 = vmatpush.msra.mxu0 %v66_v9  ;;  %266 = vmatpush.msra.mxu2 %v66_v9 }
  0x1f   :  { %216 = vmatpush.msra.mxu1 %v201_v29  ;;  %280 = vmatpush.msra.mxu3 %v201_v29 }
  0x20   :  { %90 = vmatpush.msra.mxu0 %v65_v10  ;;  %267 = vmatpush.msra.mxu2 %v65_v10 }
  0x21   :  { %217 = vmatpush.msra.mxu1 %v200_v30  ;;  %281 = vmatpush.msra.mxu3 %v200_v30 }
  0x22   :  { %91 = vmatpush.msra.mxu0 %v64_v11  ;;  %268 = vmatpush.msra.mxu2 %v64_v11 }
  0x23   :  { %218 = vmatpush.msra.mxu1 %v199_v33  ;;  %282 = vmatpush.msra.mxu3 %v199_v33 }
  0x24   :  { %92 = vmatpush.msra.mxu0 %v63_v12  ;;  %269 = vmatpush.msra.mxu2 %v63_v12 }
  0x25   :  { %219 = vmatpush.msra.mxu1 %v198_v36  ;;  %283 = vmatpush.msra.mxu3 %v198_v36 }
  0x26   :  { %93 = vmatpush.msra.mxu0 %v62_v13  ;;  %270 = vmatpush.msra.mxu2 %v62_v13 }
  0x27   :  { %220 = vmatpush.msra.mxu1 %v197_v39  ;;  %284 = vmatpush.msra.mxu3 %v197_v39 }
  0x28   :  { %94 = vmatpush.msra.mxu0 %v61_v14  ;;  %271 = vmatpush.msra.mxu2 %v61_v14 }
  0x29   :  { %221 = vmatpush.msra.mxu1 %v196_v43  ;;  %285 = vmatpush.msra.mxu3 %v196_v43 }
  0x2a   :  { %95 = vmatpush.msra.mxu0 %v60_v15  ;;  %272 = vmatpush.msra.mxu2 %v60_v15 }
  0x2b   :  { %96 = vmatmul.f32.vlgmr.msra.gmra.mxu0 %v58_v16  ;;  %99 = vmatmul.f32.vlgmr.msra.gmra.mxu2 %v59_v17 }
  0x2c   :  { %222 = vmatpush.msra.mxu1 %v195_v47  ;;  %286 = vmatpush.msra.mxu3 %v195_v47 }
  0x2e   :  { %223 = vmatpush.msra.mxu1 %v194_v52  ;;  %287 = vmatpush.msra.mxu3 %v194_v52 }
  0x30   :  { %224 = vmatpush.msra.mxu1 %v193_v56  ;;  %288 = vmatpush.msra.mxu3 %v193_v56  ;;  %v294_v56 = vld [vmem:[%s443_s4] ss:$0 sm:$0xff] }
  0xa8   :  { %v97_v24 = vpop.f32.mrf.mxu0 }
  0xa9   :  { %v400_v26 = vadd.f32 %v293_v22, %v97_v24 }
  0xab   :  { %v403_v28 = vmul.f32 0.70710677, %v400_v26  ;;  %v103_v47 = vmul.f32 0.5, %v400_v26 }
  0xad   :  { %v107_v31 = vmul.f32 %v403_v28, %v403_v28 }
  0xae   :  { %v100_v32 = vpop.f32.mrf.mxu2 }
  0xaf   :  { %v407_v34 = vmin.f32 %v107_v31, 16.0  ;;  %v409_v35 = vadd.f32 %v293_v22, %v100_v32 }
  0xb1   :  { %v109_v37 = vmul.f32 2.1237322e-06, %v407_v34  ;;  %v413_v38 = vmul.f32 0.70710677, %v409_v35  ;;  %v120_v40 = vmul.f32 3.8918573e-05, %v407_v34 }
  0xb3   :  { %v110_v41 = vadd.f32 0.00028619796, %v109_v37  ;;  %v147_v42 = vmul.f32 %v413_v38, %v413_v38  ;;  %v121_v44 = vadd.f32 0.001143296, %v120_v40 }
  0xb5   :  { %v111_v45 = vmul.f32 %v110_v41, %v407_v34  ;;  %v148_v46 = vmin.f32 %v147_v42, 16.0  ;;  %v122_v48 = vmul.f32 %v121_v44, %v407_v34 }
  0xb7   :  { %v149_v49 = vmul.f32 2.1237322e-06, %v148_v46  ;;  %v160_v50 = vmul.f32 3.8918573e-05, %v148_v46  ;;  %v112_v51 = vadd.f32 0.0036580483, %v111_v45 }
  0xb8   :  { %v123_v53 = vadd.f32 0.014752088, %v122_v48 }
  0xb9   :  { %v150_v54 = vadd.f32 0.00028619796, %v149_v49  ;;  %v161_v55 = vadd.f32 0.001143296, %v160_v50  ;;  %v113_v60 = vmul.f32 %v112_v51, %v407_v34 }
  0xba   :  { %v124_v57 = vmul.f32 %v123_v53, %v407_v34  ;;  %v104_v53 = vmul.f32 0.5, %v409_v35 }
  0xbb   :  { %v151_v58 = vmul.f32 %v150_v54, %v148_v46  ;;  %v162_v59 = vmul.f32 %v161_v55, %v148_v46  ;;  %v114_v2 = vadd.f32 0.05243302, %v113_v60 }
  0xbc   :  { %v125_v61 = vadd.f32 0.112945676, %v124_v57 }
  0xbd   :  { %v152_v62 = vadd.f32 0.0036580483, %v151_v58  ;;  %v163_v63 = vadd.f32 0.014752088, %v162_v59  ;;  %v115_v8 = vmul.f32 %v114_v2, %v407_v34 }
  0xbe   :  { %v126_v0 = vmul.f32 %v125_v61, %v407_v34 }
  0xbf   :  { %v164_v1 = vmul.f32 %v163_v63, %v148_v46  ;;  %v153_v4 = vmul.f32 %v152_v62, %v148_v46  ;;  %v116_v13 = vadd.f32 0.18741608, %v115_v8 }
  0xc0   :  { %v127_v3 = vadd.f32 0.4994258, %v126_v0 }
  0xc1   :  { %v165_v5 = vadd.f32 0.112945676, %v164_v1  ;;  %v154_v10 = vadd.f32 0.05243302, %v153_v4  ;;  %v117_v17 = vmul.f32 %v116_v13, %v407_v34 }
  0xc2   :  { %v128_v6 = vmul.f32 %v127_v3, %v407_v34 }
  0xc3   :  { %v166_v7 = vmul.f32 %v165_v5, %v148_v46  ;;  %v155_v14 = vmul.f32 %v154_v10, %v148_v46  ;;  %v118_v21 = vadd.f32 1.1283791, %v117_v17 }
  0xc4   :  { %v129_v9 = vadd.f32 1.0, %v128_v6 }
  0xc5   :  { %v167_v11 = vadd.f32 0.4994258, %v166_v7  ;;  %v156_v18 = vadd.f32 0.18741608, %v155_v14  ;;  %v119_v31 = vmul.f32 %v118_v21, %v403_v28 }
  0xc6   :  { %295 = vrcp.f32 %v129_v9  ;;  %v141_v22 = vand.u32 2147483648, %v129_v9  ;;  %v139_v27 = vand.u32 2147483647, %v129_v9  ;;  %vm135_vm1 = vweird.f32 %v129_v9 }
  0xc7   :  { %v168_v12 = vmul.f32 %v167_v11, %v148_v46  ;;  %v157_v24 = vmul.f32 %v156_v18, %v148_v46 }
  0xc8   :  { %v142_v32 = vor.u32 1.1754944e-38, %v141_v22  ;;  %vm140_vm3 = vcmp.eq.f32.partialorder %v139_v27, 8.507059e+37 }
  0xc9   :  { %v169_v15 = vadd.f32 1.0, %v168_v12  ;;  %v158_v36 = vadd.f32 1.1283791, %v157_v24 }
  0xcb   :  { %297 = vrcp.f32 %v169_v15  ;;  %v181_v37 = vand.u32 2147483648, %v169_v15  ;;  %v179_v41 = vand.u32 2147483647, %v169_v15  ;;  %vm175_vm5 = vweird.f32 %v169_v15 }
  0xcc   :  { %v296_v16 = vpop.eup %295  ;;  %v159_v46 = vmul.f32 %v158_v36, %v413_v38 }
  0xcd   :  { %v131_v19 = vmul.f32 %v296_v16, %v129_v9  ;;  %vm136_vm0 = vweird.f32 %v296_v16  ;;  %v182_v45 = vor.u32 1.1754944e-38, %v181_v37  ;;  %vm180_vm7 = vcmp.eq.f32.partialorder %v179_v41, 8.507059e+37 }
  0xce   :  { %vm137_vm2 = vmor %vm135_vm1, %vm136_vm0 }
  0xcf   :  { %v132_v20 = vsub.f32 1.0, %v131_v19 }
  0xd1   :  { %v298_v23 = vpop.eup %297  ;;  %v133_v25 = vmul.f32 %v296_v16, %v132_v20 }
  0xd2   :  { %v171_v29 = vmul.f32 %v298_v23, %v169_v15  ;;  %vm176_vm4 = vweird.f32 %v298_v23 }
  0xd3   :  { %v134_v30 = vadd.f32 %v296_v16, %v133_v25  ;;  %vm177_vm6 = vmor %vm175_vm5, %vm176_vm4 }
  0xd4   :  { %v172_v33 = vsub.f32 1.0, %v171_v29 }
  0xd5   :  { %v138_v34 = vsel %vm137_vm2, %v296_v16, %v134_v30 }
  0xd6   :  { %v143_v39 = vsel %vm140_vm3, %v142_v32, %v138_v34  ;;  %v173_v40 = vmul.f32 %v298_v23, %v172_v33 }
  0xd7   :  { %v144_v42 = vmul.f32 %v143_v39, %v119_v31 }
  0xd8   :  { %v174_v43 = vadd.f32 %v298_v23, %v173_v40 }
  0xd9   :  { %v255_v44 = vclamps-f32 %v144_v42, 1.0 }
  0xda   :  { %v178_v28 = vsel %vm177_vm6, %v298_v23, %v174_v43 }
  0xdb   :  { %v187_v48 = vadd.f32 1.0, %v255_v44  ;;  %v183_v49 = vsel %vm180_vm7, %v182_v45, %v178_v28 }
  0xdc   :  { %v184_v50 = vmul.f32 %v183_v49, %v159_v46 }
  0xdd   :  { %v189_v51 = vmul.f32 %v187_v48, %v103_v47 }
  0xde   :  { %v256_v52 = vclamps-f32 %v184_v50, 1.0 }
  0xdf   :  { %225 = vmatmul.f32.vlgmr.msra.gmra.mxu1 %v189_v51 }
  0xe0   :  { %v188_v54 = vadd.f32 1.0, %v256_v52 }
  0xe2   :  { %v190_v55 = vmul.f32 %v188_v54, %v104_v53 }
  0xe4   :  { %228 = vmatmul.f32.vlgmr.msra.gmra.mxu3 %v190_v55 }
 0x15c   :  { %v226_v38 = vpop.f32.mrf.mxu1 }
 0x15d   :  { %v245_v57 = vadd.f32 %v294_v56, %v226_v38 }
 0x15f   :  { %247 = vst [vmem:[%s444_s5] sm:$0xff] %v245_v57 }
 0x167   :  { %v229_v26 = vpop.f32.mrf.mxu3 }
 0x168   :  { %v246_v58 = vadd.f32 %v294_v56, %v229_v26 }
 0x16a   :  { %248 = vst [vmem:[%s444_s5 + $0x8] sm:$0xff] %v246_v58 }
 0x16b   :  { %253 = vsyncpa [#allocation4], 1 }
 0x16c   :  { %254 = vsyncpa [#allocation6], 1 }

</bundles_post_ra>
